<compile_context>
chip_gen: v6e
topology: v6e:2x2x1
jax: 0.10.0
libtpu: 0.0.40
codegen_flags: <defaults>
</compile_context>

<pallas_src>
import functools
import math

import jax
import jax.numpy as jnp
from jax.experimental import pallas as pl
from jax.experimental.pallas import tpu as pltpu

LANE = 128     # lane width (last dim)
SUB_B = 16     # batch-tile sublane granularity (bf16 packs 2 rows / sublane)

_SQRT_2_OVER_PI = 0.7978845608028654
_GELU_C = 0.044715


def _gelu(x):
    # tanh-approximate GELU in f32; tanh rides the EUP slot (free vs VALU).
    c = jnp.asarray(_SQRT_2_OVER_PI, x.dtype)
    return 0.5 * x * (1.0 + jnp.tanh(c * (x + _GELU_C * x * x * x)))


# ------------------------------- fused kernel --------------------------------
def _bc_mlp_kernel(x_ref, w_ref, b_ref, out_ref, *, num_layers):
    # x_ref:   [TB, 128]      bf16  (batch tile, lane-padded input)
    # w_ref:   [L, 128, 128]  bf16  (all layer weights, zero-padded)
    # b_ref:   [L, 1, 128]    f32   (all layer biases, zero-padded)
    # out_ref: [TB, 128]      f32   (lane-dense padded output)
    h = x_ref[...]                                   # bf16: layer-0 MXU operand
    for layer in range(num_layers):                  # static unroll
        lhs = h if h.dtype == jnp.bfloat16 else h.astype(jnp.bfloat16)
        y = jnp.dot(lhs, w_ref[layer],
                    preferred_element_type=jnp.float32)   # f32 accumulate
        y = y + b_ref[layer]                              # f32 bias add (VPU)
        if layer < num_layers - 1:
            y = _gelu(y)                                  # f32 VPU/EUP math
        h = y
    out_ref[...] = h


# --------------------------------- wrapper -----------------------------------
def behavior_cloning_forward(x, w_slab, b_slab, *, dims):
    """x: [B, dims[0]] -> [B, dims[-1]] f32 (dims[-1] == 2)."""
    num_layers = w_slab.shape[0]
    B, d_in = x.shape
    assert d_in == dims[0] and d_in <= LANE and max(dims) <= LANE

    # Batch tiling: pad to full (bf16-packed) sublanes; cap tile at 1024 rows
    # and force >=2 grid steps when the batch is big enough so the "parallel"
    # axis can shard across both v7x TensorCores.
    b16 = -(-B // SUB_B) * SUB_B
    tb = min(b16, 1024)
    if b16 >= 2 * SUB_B and b16 // tb < 2:
        tb = -(-(b16 // 2) // SUB_B) * SUB_B
    b_pad = -(-b16 // tb) * tb

    # Stream the input in bf16 (immediately consumed by the bf16 MXU op);
    # jnp.pad avoids the extra materialized copy of zeros().at[].set.
    x_pad = jnp.pad(x.astype(jnp.bfloat16),
                    ((0, b_pad - B), (0, LANE - d_in)))

    # Scoped-VMEM budget from (tb, L): worst-case double buffering of every
    # operand + 2 MiB headroom, floored at 4 MiB.
    vmem_limit = (
        2 * tb * LANE * 2                      # x tile, bf16, double-buffered
        + 2 * tb * LANE * 4                    # out tile, f32, double-buffered
        + 2 * num_layers * LANE * LANE * 2     # W slab, bf16
        + 2 * num_layers * 8 * LANE * 4        # b slab, f32 (sublane-padded)
        + (2 << 20)                            # headroom
    )
    vmem_limit = max(4 << 20, int(vmem_limit))

    kernel = functools.partial(_bc_mlp_kernel, num_layers=num_layers)
    out_pad = pl.pallas_call(
        kernel,
        out_shape=jax.ShapeDtypeStruct((b_pad, LANE), jnp.float32),
        grid_spec=pltpu.PrefetchScalarGridSpec(
            num_scalar_prefetch=0,
            grid=(b_pad // tb,),
            in_specs=[
                pl.BlockSpec((tb, LANE), lambda i: (i, 0)),                   # x
                pl.BlockSpec((num_layers, LANE, LANE), lambda i: (0, 0, 0)),  # W slab
                pl.BlockSpec((num_layers, 1, LANE), lambda i: (0, 0, 0)),     # b slab
            ],
            out_specs=pl.BlockSpec((tb, LANE), lambda i: (i, 0)),
        ),
        compiler_params=pltpu.CompilerParams(
            dimension_semantics=("parallel",),      # megacore-ready over batch
            vmem_limit_bytes=vmem_limit,
        ),
    )(x_pad, w_slab, b_slab)

    return out_pad[:B, : dims[-1]]


# --------------------------- deterministic params ----------------------------
def init_params(key, cfg_dims):
    """cfg_dims e.g. [32, 64, 32]; BehaviorCloning appends 2 -> [32,64,32,2]."""
    dims = tuple(list(cfg_dims) + [2])
    num_layers = len(dims) - 1
    w = jnp.zeros((num_layers, LANE, LANE), jnp.float32)
    b = jnp.zeros((num_layers, 1, LANE), jnp.float32)
    keys = jax.random.split(key, 2 * num_layers)
    for l in range(num_layers):
        fan_in, fan_out = dims[l], dims[l + 1]
        bound = 1.0 / math.sqrt(fan_in)               # torch nn.Linear default
        wl = jax.random.uniform(keys[2 * l], (fan_in, fan_out),
                                jnp.float32, -bound, bound)
        bl = jax.random.uniform(keys[2 * l + 1], (1, fan_out),
                                jnp.float32, -bound, bound)
        w = w.at[l, :fan_in, :fan_out].set(wl)
        b = b.at[l, :, :fan_out].set(bl)
    return {"w": w.astype(jnp.bfloat16),   # bf16 slab fed to the kernel
            "w_f32": w,                    # f32 master (fidelity reference only)
            "b": b, "dims": dims}


# ------------------------------ pure-JAX references --------------------------
def _reference_forward_bf16(x, params):
    """Matches the kernel numerics exactly (bf16 MXU operands, f32 accum)."""
    dims = params["dims"]
    num_layers = params["w"].shape[0]
    h = x.astype(jnp.float32)
    for l in range(num_layers):
        wl = params["w"][l, : dims[l], : dims[l + 1]]          # bf16
        bl = params["b"][l, :, : dims[l + 1]]                  # f32
        h = jnp.dot(h.astype(jnp.bfloat16), wl,
                    preferred_element_type=jnp.float32) + bl
        if l < num_layers - 1:
            h = _gelu(h)
    return h


def _reference_forward_f32(x, params):
    """True f32 Linear path (what the PyTorch module computes)."""
    dims = params["dims"]
    num_layers = params["w_f32"].shape[0]
    h = x.astype(jnp.float32)
    for l in range(num_layers):
        wl = params["w_f32"][l, : dims[l], : dims[l + 1]]
        bl = params["b"][l, :, : dims[l + 1]]
        h = jnp.dot(h, wl, preferred_element_type=jnp.float32) + bl
        if l < num_layers - 1:
            h = _gelu(h)
    return h


if __name__ == "__main__":
    B, D_in = 2, 32
    cfg_dims = [D_in, 64, 32]            # cfg.dims; forward appends final dim 2

    key = jax.random.PRNGKey(0)
    kx, kw = jax.random.split(key)
    x = jax.random.normal(kx, (B, D_in), jnp.float32)
    params = init_params(kw, cfg_dims)

    # Jitted closure keeps the bf16 weight slab device-resident across calls
    # (review item 8); dims is a static python tuple inside the closure.
    forward = jax.jit(functools.partial(behavior_cloning_forward,
                                        dims=params["dims"]))
    out = forward(x, params["w"], params["b"])
    jax.block_until_ready(out)

    assert out.shape == (B, 2) and out.dtype == jnp.float32

    # (a) exact check against a reference that mirrors the kernel's bf16 path
    ref_bf16 = _reference_forward_bf16(x, params)
    assert jnp.allclose(out, ref_bf16, rtol=1e-3, atol=1e-3), (out, ref_bf16)

    # (b) fidelity check against the true f32 Linear path (bf16 weight
    #     quantization error must stay small for the 2-dim control output)
    ref_f32 = _reference_forward_f32(x, params)
    assert jnp.allclose(out, ref_f32, rtol=5e-2, atol=5e-2), (out, ref_f32)

    print("KERNEL_OK")
</pallas_src>

<mosaic_0001>
module attributes {stable_mosaic.version = 11 : i64} {
  func.func @_bc_mlp_kernel(%arg0: i32, %arg1: memref<16x128xbf16, #tpu.memory_space<vmem>>, %arg2: memref<3x128x128xbf16, #tpu.memory_space<vmem>>, %arg3: memref<3x1x128xf32, #tpu.memory_space<vmem>>, %arg4: memref<16x128xf32, #tpu.memory_space<vmem>>) attributes {dimension_semantics = [#tpu.dimension_semantics<parallel>], iteration_bounds = array<i64: 1>, scalar_prefetch = 0 : i64, scratch_operands = 0 : i64, tpu.core_type = #tpu.core_type<tc>, window_params = [{transform_indices = @transform_0, window_bounds = array<i64: 16, 128>}, {pipeline_mode = #tpu.pipeline_mode<synchronous>, transform_indices = @transform_1, window_bounds = array<i64: 3, 128, 128>}, {pipeline_mode = #tpu.pipeline_mode<synchronous>, transform_indices = @transform_2, window_bounds = array<i64: 3, 1, 128>}, {transform_indices = @transform_3, window_bounds = array<i64: 16, 128>}]} {
    %c0 = arith.constant 0 : index
    %c0_0 = arith.constant 0 : index
    %0 = vector.load %arg1[%c0, %c0_0] : memref<16x128xbf16, #tpu.memory_space<vmem>>, vector<16x128xbf16>
    %c0_1 = arith.constant 0 : index
    %c0_2 = arith.constant 0 : index
    %c0_3 = arith.constant 0 : index
    %1 = vector.load %arg2[%c0_1, %c0_2, %c0_3] : memref<3x128x128xbf16, #tpu.memory_space<vmem>>, vector<1x128x128xbf16>
    %2 = vector.shape_cast %1 : vector<1x128x128xbf16> to vector<128x128xbf16>
    %cst = arith.constant dense<0.000000e+00> : vector<16x128xf32>
    %3 = tpu.matmul %0, %2, %cst {dimension_numbers = #tpu.dot_dimension_numbers<[1], [0], [0], [1], [0, 0, 1, 1], [], []>} : vector<16x128xbf16>, vector<128x128xbf16>, vector<16x128xf32> -> vector<16x128xf32>
    %c0_4 = arith.constant 0 : index
    %c0_5 = arith.constant 0 : index
    %c0_6 = arith.constant 0 : index
    %4 = vector.load %arg3[%c0_4, %c0_5, %c0_6] : memref<3x1x128xf32, #tpu.memory_space<vmem>>, vector<1x1x128xf32>
    %5 = vector.shape_cast %4 : vector<1x1x128xf32> to vector<1x128xf32>
    %6 = vector.broadcast %5 : vector<1x128xf32> to vector<16x128xf32>
    %7 = arith.addf %3, %6 : vector<16x128xf32>
    %cst_7 = arith.constant 5.000000e-01 : f32
    %8 = vector.broadcast %cst_7 : f32 to vector<16x128xf32>
    %9 = arith.mulf %8, %7 : vector<16x128xf32>
    %cst_8 = arith.constant 4.471500e-02 : f32
    %10 = vector.broadcast %cst_8 : f32 to vector<16x128xf32>
    %11 = arith.mulf %10, %7 : vector<16x128xf32>
    %12 = arith.mulf %11, %7 : vector<16x128xf32>
    %13 = arith.mulf %12, %7 : vector<16x128xf32>
    %14 = arith.addf %7, %13 : vector<16x128xf32>
    %cst_9 = arith.constant 0.797884583 : f32
    %15 = vector.broadcast %cst_9 : f32 to vector<16x128xf32>
    %16 = arith.mulf %15, %14 : vector<16x128xf32>
    %17 = math.tanh %16 : vector<16x128xf32>
    %cst_10 = arith.constant 1.000000e+00 : f32
    %18 = vector.broadcast %cst_10 : f32 to vector<16x128xf32>
    %19 = arith.addf %18, %17 : vector<16x128xf32>
    %20 = arith.mulf %9, %19 : vector<16x128xf32>
    %21 = arith.truncf %20 : vector<16x128xf32> to vector<16x128xbf16>
    %c1 = arith.constant 1 : index
    %c0_11 = arith.constant 0 : index
    %c0_12 = arith.constant 0 : index
    %22 = vector.load %arg2[%c1, %c0_11, %c0_12] : memref<3x128x128xbf16, #tpu.memory_space<vmem>>, vector<1x128x128xbf16>
    %23 = vector.shape_cast %22 : vector<1x128x128xbf16> to vector<128x128xbf16>
    %cst_13 = arith.constant dense<0.000000e+00> : vector<16x128xf32>
    %24 = tpu.matmul %21, %23, %cst_13 {dimension_numbers = #tpu.dot_dimension_numbers<[1], [0], [0], [1], [0, 0, 1, 1], [], []>} : vector<16x128xbf16>, vector<128x128xbf16>, vector<16x128xf32> -> vector<16x128xf32>
    %c1_14 = arith.constant 1 : index
    %c0_15 = arith.constant 0 : index
    %c0_16 = arith.constant 0 : index
    %25 = vector.load %arg3[%c1_14, %c0_15, %c0_16] : memref<3x1x128xf32, #tpu.memory_space<vmem>>, vector<1x1x128xf32>
    %26 = vector.shape_cast %25 : vector<1x1x128xf32> to vector<1x128xf32>
    %27 = vector.broadcast %26 : vector<1x128xf32> to vector<16x128xf32>
    %28 = arith.addf %24, %27 : vector<16x128xf32>
    %cst_17 = arith.constant 5.000000e-01 : f32
    %29 = vector.broadcast %cst_17 : f32 to vector<16x128xf32>
    %30 = arith.mulf %29, %28 : vector<16x128xf32>
    %cst_18 = arith.constant 4.471500e-02 : f32
    %31 = vector.broadcast %cst_18 : f32 to vector<16x128xf32>
    %32 = arith.mulf %31, %28 : vector<16x128xf32>
    %33 = arith.mulf %32, %28 : vector<16x128xf32>
    %34 = arith.mulf %33, %28 : vector<16x128xf32>
    %35 = arith.addf %28, %34 : vector<16x128xf32>
    %cst_19 = arith.constant 0.797884583 : f32
    %36 = vector.broadcast %cst_19 : f32 to vector<16x128xf32>
    %37 = arith.mulf %36, %35 : vector<16x128xf32>
    %38 = math.tanh %37 : vector<16x128xf32>
    %cst_20 = arith.constant 1.000000e+00 : f32
    %39 = vector.broadcast %cst_20 : f32 to vector<16x128xf32>
    %40 = arith.addf %39, %38 : vector<16x128xf32>
    %41 = arith.mulf %30, %40 : vector<16x128xf32>
    %42 = arith.truncf %41 : vector<16x128xf32> to vector<16x128xbf16>
    %c2 = arith.constant 2 : index
    %c0_21 = arith.constant 0 : index
    %c0_22 = arith.constant 0 : index
    %43 = vector.load %arg2[%c2, %c0_21, %c0_22] : memref<3x128x128xbf16, #tpu.memory_space<vmem>>, vector<1x128x128xbf16>
    %44 = vector.shape_cast %43 : vector<1x128x128xbf16> to vector<128x128xbf16>
    %cst_23 = arith.constant dense<0.000000e+00> : vector<16x128xf32>
    %45 = tpu.matmul %42, %44, %cst_23 {dimension_numbers = #tpu.dot_dimension_numbers<[1], [0], [0], [1], [0, 0, 1, 1], [], []>} : vector<16x128xbf16>, vector<128x128xbf16>, vector<16x128xf32> -> vector<16x128xf32>
    %c2_24 = arith.constant 2 : index
    %c0_25 = arith.constant 0 : index
    %c0_26 = arith.constant 0 : index
    %46 = vector.load %arg3[%c2_24, %c0_25, %c0_26] : memref<3x1x128xf32, #tpu.memory_space<vmem>>, vector<1x1x128xf32>
    %47 = vector.shape_cast %46 : vector<1x1x128xf32> to vector<1x128xf32>
    %48 = vector.broadcast %47 : vector<1x128xf32> to vector<16x128xf32>
    %49 = arith.addf %45, %48 : vector<16x128xf32>
    %c0_27 = arith.constant 0 : index
    %c0_28 = arith.constant 0 : index
    %50 = vector.load %arg4[%c0_27, %c0_28] : memref<16x128xf32, #tpu.memory_space<vmem>>, vector<16x128xf32>
    tpu.vector_store %arg4[%c0_27, %c0_28], %49 {strides = array<i32>} : memref<16x128xf32, #tpu.memory_space<vmem>>, vector<16x128xf32>,
    return
  }
  func.func @transform_0(%arg0: i32) -> (i32, i32) {
    %c0_i32 = arith.constant 0 : i32
    %c0_i32_0 = arith.constant 0 : i32
    return %arg0, %c0_i32 : i32, i32
  }
  func.func @transform_1(%arg0: i32) -> (i32, i32, i32) {
    %c0_i32 = arith.constant 0 : i32
    %c0_i32_0 = arith.constant 0 : i32
    %c0_i32_1 = arith.constant 0 : i32
    %c0_i32_2 = arith.constant 0 : i32
    return %c0_i32, %c0_i32_0, %c0_i32_1 : i32, i32, i32
  }
  func.func @transform_2(%arg0: i32) -> (i32, i32, i32) {
    %c0_i32 = arith.constant 0 : i32
    %c0_i32_0 = arith.constant 0 : i32
    %c0_i32_1 = arith.constant 0 : i32
    %c0_i32_2 = arith.constant 0 : i32
    return %c0_i32, %c0_i32_0, %c0_i32_1 : i32, i32, i32
  }
  func.func @transform_3(%arg0: i32) -> (i32, i32) {
    %c0_i32 = arith.constant 0 : i32
    %c0_i32_0 = arith.constant 0 : i32
    return %arg0, %c0_i32 : i32, i32
  }
}

</mosaic_0001>

<bundles_post_ra>
// kernel: behavior_cloning_forward.1
= control target key start
LH: loop header
LB: loop body
LE: loop exit
PB: predicated region body
PF: predicated region fallthrough
CT: control target
= control target key end

     0   :  { %8 = vsyncpa [#allocation3], 0  ;;  %s599_s12 = smov [#allocation2]   ;;  %s675_s0 = inlined_call_operand.vmem [shape: bf16[16,128], index: 0, kind: input, shape index: {}]   ;;  %s676_s1 = inlined_call_operand.hbm [shape: bf16[3,128,128], index: 1, kind: input, shape index: {}]   ;;  %s677_s2 = inlined_call_operand.vmem [shape: f32[3,1,128], index: 2, kind: input, shape index: {}]   ;;  %s678_s3 = inlined_call_operand.vmem [shape: f32[16,128], index: 3, kind: output, shape index: {}]  }
   0x1   :  { %s16_s13 = sshll.u32 %s599_s12, 4  ;;  %s17_s13 = int_to_ptr.vmem [resolvable:$true] %s16_s13 }
   0x2   :  { %s585_s14 = scalar_lea.vmem %s17_s13, 3072  ;;  %p590_p1 = scmp.lt.s32.totalorder %s17_s13, %s17_s13 }
   0x3   :  { %p586_p0 = scmp.ne.s32.totalorder %s17_s13, %s585_s14  ;;  %p591_p2 = scmp.lt.s32.totalorder %s585_s14, %s585_s14 }
   0x5   :  { %p592_p3 = por %p591_p2, %p590_p1 }
   0x7   :  { %p593_p4 = pnand %p592_p3, %p586_p0 }
   0x9   :  { %596 = shalt.err (!%p593_p4)
}
   0xa   :  { %s600_s15 = smov 64   ;;  %s601_s16 = smov 4  }
   0xb   :  { %22 = dma.hbm_to_vmem [thread:$0]  %s676_s1, 3072, %s17_s13, [#allocation3], %s600_s15, %s600_s15, %s601_s16  }
   0xc   :  { %597 = dma.done.wait [#allocation3], 3072  }
   0xd   :  { %598 = vsyncadd [#allocation3], 4294964224  ;;  %v602_v0 = vmov 0.0   ;;  %vm603_vm0 = vmmov 0   ;;  %v544_v1 = vld [vmem:[#allocation2 + $0x38] sm:$0xff]   ;;  %v545_v2 = vld [vmem:[#allocation2 + $0x30] sm:$0xff]  }
   0xe   :  { %479 = vmatprep.subr.bf16.mxu0 %v602_v0  ;;  %495 = vmatprep.mubr.msk.bf16.mxu0 %vm603_vm0, %v602_v0  ;;  %v546_v3 = vld [vmem:[#allocation2 + $0x28] sm:$0xff]   ;;  %v547_v4 = vld [vmem:[#allocation2 + $0x20] sm:$0xff]   ;;  %v548_v5 = vld [vmem:[#allocation2 + $0x18] sm:$0xff]  }
   0xf   :  { %499 = vmatprep.subr.bf16.mxu1 %v602_v0  ;;  %515 = vmatprep.mubr.msk.bf16.mxu1 %vm603_vm0, %v602_v0  ;;  %v549_v6 = vld [vmem:[#allocation2 + $0x10] sm:$0xff]   ;;  %v550_v7 = vld [vmem:[#allocation2 + $0x8] sm:$0xff]   ;;  %v551_v8 = vld [vmem:[#allocation2] sm:$0xff]  }
  0x10   :  { %480 = vmatpush3.bf16.msra.mxu0 %v544_v1  ;;  %v552_v9 = vld [vmem:[%s675_s0] sm:$0xff]   ;;  %v553_v10 = vld [vmem:[#allocation2 + $0x78] sm:$0xff]   ;;  %v554_v11 = vld [vmem:[#allocation2 + $0x70] sm:$0xff]  }
  0x11   :  { %481 = vmatprep.subr.bf16.mxu0 %v602_v0  ;;  %500 = vmatpush3.bf16.msra.mxu1 %v553_v10  ;;  %v555_v12 = vld [vmem:[#allocation2 + $0x68] sm:$0xff]   ;;  %v556_v13 = vld [vmem:[#allocation2 + $0x60] sm:$0xff]   ;;  %v557_v14 = vld [vmem:[#allocation2 + $0x58] sm:$0xff]  }
  0x12   :  { %501 = vmatprep.subr.bf16.mxu1 %v602_v0  ;;  %v558_v15 = vld [vmem:[#allocation2 + $0x50] sm:$0xff]   ;;  %v559_v16 = vld [vmem:[#allocation2 + $0x48] sm:$0xff]   ;;  %v560_v17 = vld [vmem:[#allocation2 + $0x40] sm:$0xff]  }
  0x13   :  { %v422_v18 = vld [vmem:[%s677_s2] ss:$0 sm:$0xff]  ;;  %v561_v44 = vld [vmem:[#allocation2 + $0xb8] sm:$0xff]   ;;  %v562_v45 = vld [vmem:[#allocation2 + $0xb0] sm:$0xff]  }
  0x14   :  { %482 = vmatpush3.bf16.msra.mxu0 %v545_v2  ;;  %v563_v46 = vld [vmem:[#allocation2 + $0xa8] sm:$0xff]   ;;  %v564_v47 = vld [vmem:[#allocation2 + $0xa0] sm:$0xff]   ;;  %v565_v48 = vld [vmem:[#allocation2 + $0x98] sm:$0xff]  }
  0x15   :  { %483 = vmatprep.subr.bf16.mxu0 %v602_v0  ;;  %502 = vmatpush3.bf16.msra.mxu1 %v554_v11  ;;  %v566_v49 = vld [vmem:[#allocation2 + $0x90] sm:$0xff]   ;;  %v567_v50 = vld [vmem:[#allocation2 + $0x88] sm:$0xff]   ;;  %v568_v51 = vld [vmem:[#allocation2 + $0x80] sm:$0xff]  }
  0x16   :  { %503 = vmatprep.subr.bf16.mxu1 %v602_v0  ;;  %v433_v52 = vld [vmem:[%s677_s2 + $0x1] ss:$0 sm:$0xff] }
  0x18   :  { %484 = vmatpush3.bf16.msra.mxu0 %v546_v3 }
  0x19   :  { %485 = vmatprep.subr.bf16.mxu0 %v602_v0  ;;  %504 = vmatpush3.bf16.msra.mxu1 %v555_v12 }
  0x1a   :  { %505 = vmatprep.subr.bf16.mxu1 %v602_v0 }
  0x1c   :  { %486 = vmatpush3.bf16.msra.mxu0 %v547_v4 }
  0x1d   :  { %487 = vmatprep.subr.bf16.mxu0 %v602_v0  ;;  %506 = vmatpush3.bf16.msra.mxu1 %v556_v13 }
  0x1e   :  { %507 = vmatprep.subr.bf16.mxu1 %v602_v0 }
  0x20   :  { %488 = vmatpush3.bf16.msra.mxu0 %v548_v5 }
  0x21   :  { %489 = vmatprep.subr.bf16.mxu0 %v602_v0  ;;  %508 = vmatpush3.bf16.msra.mxu1 %v557_v14  ;;  %v443_v14 = vld [vmem:[%s677_s2 + $0x2] ss:$0 sm:$0xff] }
  0x22   :  { %509 = vmatprep.subr.bf16.mxu1 %v602_v0 }
  0x24   :  { %490 = vmatpush3.bf16.msra.mxu0 %v549_v6 }
  0x25   :  { %491 = vmatprep.subr.bf16.mxu0 %v602_v0  ;;  %510 = vmatpush3.bf16.msra.mxu1 %v558_v15 }
  0x26   :  { %511 = vmatprep.subr.bf16.mxu1 %v602_v0 }
  0x28   :  { %492 = vmatpush3.bf16.msra.mxu0 %v550_v7 }
  0x29   :  { %493 = vmatprep.subr.bf16.mxu0 %v602_v0  ;;  %512 = vmatpush3.bf16.msra.mxu1 %v559_v16 }
  0x2a   :  { %513 = vmatprep.subr.bf16.mxu1 %v602_v0 }
  0x2c   :  { %494 = vmatpush3.bf16.msra.mxu0 %v551_v8 }
  0x2d   :  { %519 = vmatprep.subr.bf16.mxu0 %v602_v0  ;;  %514 = vmatpush3.bf16.msra.mxu1 %v560_v17 }
  0x2f   :  { %496 = vmatmul.mubr.bf16.vlgmr.msra.gmra.mxu0 %v552_v9 }
  0x30   :  { %535 = vmatprep.mubr.msk.bf16.mxu0 %vm603_vm0, %v602_v0  ;;  %520 = vmatpush3.bf16.msra.mxu0 %v561_v44 }
  0x31   :  { %521 = vmatprep.subr.bf16.mxu0 %v602_v0 }
  0x34   :  { %522 = vmatpush3.bf16.msra.mxu0 %v562_v45 }
  0x35   :  { %523 = vmatprep.subr.bf16.mxu0 %v602_v0 }
  0x38   :  { %524 = vmatpush3.bf16.msra.mxu0 %v563_v46 }
  0x39   :  { %525 = vmatprep.subr.bf16.mxu0 %v602_v0 }
  0x3c   :  { %526 = vmatpush3.bf16.msra.mxu0 %v564_v47 }
  0x3d   :  { %527 = vmatprep.subr.bf16.mxu0 %v602_v0 }
  0x40   :  { %528 = vmatpush3.bf16.msra.mxu0 %v565_v48 }
  0x41   :  { %529 = vmatprep.subr.bf16.mxu0 %v602_v0 }
  0x44   :  { %530 = vmatpush3.bf16.msra.mxu0 %v566_v49 }
  0x45   :  { %531 = vmatprep.subr.bf16.mxu0 %v602_v0 }
  0x48   :  { %532 = vmatpush3.bf16.msra.mxu0 %v567_v50 }
  0x49   :  { %533 = vmatprep.subr.bf16.mxu0 %v602_v0 }
  0x4c   :  { %534 = vmatpush3.bf16.msra.mxu0 %v568_v51 }
  0xef   :  { %v142_v19 = vpop.f32.mrf.mxu0 }
  0xf0   :  { %v143_v20 = vadd.f32 %v422_v18, %v142_v19 }
  0xf1   :  { %v497_v21 = vpop.f32.mrf.mxu0 }
  0xf2   :  { %v151_v22 = vmul.f32 0.044715, %v143_v20  ;;  %v149_v38 = vmul.f32 0.5, %v143_v20 }
  0xf3   :  { %v145_v23 = vpop.f32.mrf.mxu0 }
  0xf4   :  { %v153_v24 = vmul.f32 %v151_v22, %v143_v20  ;;  %v146_v25 = vadd.f32 %v422_v18, %v145_v23 }
  0xf5   :  { %v498_v26 = vpop.f32.mrf.mxu0 }
  0xf6   :  { %v155_v27 = vmul.f32 %v153_v24, %v143_v20  ;;  %v152_v28 = vmul.f32 0.044715, %v146_v25  ;;  %v150_v39 = vmul.f32 0.5, %v146_v25 }
  0xf8   :  { %v154_v29 = vmul.f32 %v152_v28, %v146_v25  ;;  %v157_v30 = vadd.f32 %v155_v27, %v143_v20 }
  0xfa   :  { %v156_v31 = vmul.f32 %v154_v29, %v146_v25  ;;  %v159_v32 = vmul.f32 0.7978846, %v157_v30 }
  0xfc   :  { %v158_v33 = vadd.f32 %v156_v31, %v146_v25  ;;  %569 = vtanh.f32 %v159_v32 }
  0xfe   :  { %v160_v34 = vmul.f32 0.7978846, %v158_v33 }
 0x100   :  { %571 = vtanh.f32 %v160_v34 }
 0x109   :  { %v570_v35 = vpop.eup %569 }
 0x10a   :  { %v163_v36 = vadd.f32 1.0, %v570_v35 }
 0x10c   :  { %v165_v41 = vmul.f32 %v163_v36, %v149_v38 }
 0x10d   :  { %v572_v37 = vpop.eup %571 }
 0x10e   :  { %v164_v40 = vadd.f32 1.0, %v572_v37 }
 0x110   :  { %v166_v42 = vmul.f32 %v164_v40, %v150_v39 }
 0x112   :  { %v167_v43 = vpack.c.bf16 %v166_v42, %v165_v41 }
 0x114   :  { %516 = vmatmul.mubr.bf16.vlgmr.msra.gmra.mxu1 %v167_v43 }
 0x1d4   :  { %v275_v53 = vpop.f32.mrf.mxu1 }
 0x1d5   :  { %v276_v54 = vadd.f32 %v433_v52, %v275_v53 }
 0x1d6   :  { %v517_v55 = vpop.f32.mrf.mxu1 }
 0x1d7   :  { %v284_v56 = vmul.f32 0.044715, %v276_v54  ;;  %v282_v8 = vmul.f32 0.5, %v276_v54 }
 0x1d8   :  { %v278_v57 = vpop.f32.mrf.mxu1 }
 0x1d9   :  { %v286_v58 = vmul.f32 %v284_v56, %v276_v54  ;;  %v279_v59 = vadd.f32 %v433_v52, %v278_v57 }
 0x1da   :  { %v518_v60 = vpop.f32.mrf.mxu1 }
 0x1db   :  { %v288_v61 = vmul.f32 %v286_v58, %v276_v54  ;;  %v285_v62 = vmul.f32 0.044715, %v279_v59  ;;  %v283_v9 = vmul.f32 0.5, %v279_v59 }
 0x1dd   :  { %v290_v63 = vadd.f32 %v288_v61, %v276_v54  ;;  %v287_v1 = vmul.f32 %v285_v62, %v279_v59 }
 0x1df   :  { %v292_v2 = vmul.f32 0.7978846, %v290_v63  ;;  %v289_v3 = vmul.f32 %v287_v1, %v279_v59 }
 0x1e1   :  { %573 = vtanh.f32 %v292_v2  ;;  %v291_v0 = vadd.f32 %v289_v3, %v279_v59 }
 0x1e3   :  { %v293_v4 = vmul.f32 0.7978846, %v291_v0 }
 0x1e5   :  { %575 = vtanh.f32 %v293_v4 }
 0x1ee   :  { %v574_v5 = vpop.eup %573 }
 0x1ef   :  { %v296_v6 = vadd.f32 1.0, %v574_v5 }
 0x1f1   :  { %v298_v11 = vmul.f32 %v296_v6, %v282_v8 }
 0x1f2   :  { %v576_v7 = vpop.eup %575 }
 0x1f3   :  { %v297_v10 = vadd.f32 1.0, %v576_v7 }
 0x1f5   :  { %v299_v12 = vmul.f32 %v297_v10, %v283_v9 }
 0x1f7   :  { %v300_v13 = vpack.c.bf16 %v299_v12, %v298_v11 }
 0x1f9   :  { %536 = vmatmul.mubr.bf16.vlgmr.msra.gmra.mxu0 %v300_v13 }
 0x2b9   :  { %v408_v15 = vpop.f32.mrf.mxu0 }
 0x2ba   :  { %v409_v16 = vadd.f32 %v443_v14, %v408_v15 }
 0x2bb   :  { %v537_v17 = vpop.f32.mrf.mxu0 }
 0x2bc   :  { %415 = vst [vmem:[%s678_s3] sm:$0xff] %v409_v16 }
 0x2bd   :  { %v411_v18 = vpop.f32.mrf.mxu0 }
 0x2be   :  { %v412_v19 = vadd.f32 %v443_v14, %v411_v18 }
 0x2bf   :  { %v538_v20 = vpop.f32.mrf.mxu0 }
 0x2c0   :  { %416 = vst [vmem:[%s678_s3 + $0x8] sm:$0xff] %v412_v19 }
 0x2c1   :  { %421 = vsyncpa [#allocation3], 1 }

</bundles_post_ra>
